<compile_context>
chip_gen: v5e
topology: v5e:2x2
jax: 0.10.0
libtpu: 0.0.40
codegen_flags: <defaults>
</compile_context>

<pallas_src>
import functools
import math

import jax
import jax.numpy as jnp
from jax.experimental import pallas as pl
from jax.experimental.pallas import tpu as pltpu


def _fused_subsample3_kernel(x_ref, w1_ref, b1_ref, w2_ref, b2_ref, wl_ref, bl_ref,
                             pe_ref, o_ref, h1_ref, *, t1, t2, compute_dtype):
    """One batch element, everything VMEM-resident.

    x_ref:  (T, idim)  compute_dtype        (batch dim squeezed by BlockSpec None)
    w1_ref: (3, idim, odim) compute_dtype    b1_ref: (1, odim) f32
    w2_ref: (5, odim, odim) compute_dtype    b2_ref: (1, odim) f32
    wl_ref: (odim, odim)    compute_dtype    bl_ref: (1, odim) f32   (xscale folded)
    pe_ref: (T2, odim) f32                   (precomputed positional encoding)
    o_ref:  (T2, odim)
    h1_ref: VMEM (T1, odim) compute_dtype scratch -- conv1 activation kept on-chip
    """
    # ---- conv1: Conv1d(idim, odim, 3, 1) + ReLU ----
    # Three accumulated GEMMs over sublane-shifted views (no im2col assembly,
    # no masked lane-strip writes).
    acc1 = jnp.dot(x_ref[0:t1, :], w1_ref[0], preferred_element_type=jnp.float32)
    for k in range(1, 3):                                   # static unroll, 3 taps
        acc1 += jnp.dot(x_ref[k:k + t1, :], w1_ref[k],
                        preferred_element_type=jnp.float32)
    h1_ref[...] = jnp.maximum(acc1 + b1_ref[...], 0.0).astype(compute_dtype)

    # ---- conv2: Conv1d(odim, odim, 5, 3) + ReLU ----
    # Five accumulated GEMMs on stride-3 views of the VMEM-resident conv1 output.
    acc2 = jnp.dot(h1_ref[pl.ds(0, t2, stride=3), :], w2_ref[0],
                   preferred_element_type=jnp.float32)
    for k in range(1, 5):                                   # static unroll, 5 taps
        acc2 += jnp.dot(h1_ref[pl.ds(k, t2, stride=3), :], w2_ref[k],
                        preferred_element_type=jnp.float32)
    h2 = jnp.maximum(acc2 + b2_ref[...], 0.0).astype(compute_dtype)

    # ---- Linear(odim, odim) (sqrt(odim) pre-folded) + positional encoding ----
    y = jnp.dot(h2, wl_ref[...], preferred_element_type=jnp.float32) + bl_ref[...]
    o_ref[...] = (y + pe_ref[...]).astype(o_ref.dtype)


def conv1d_subsampling3(x, x_mask, params, *, compute_dtype=jnp.bfloat16,
                        out_dtype=None):
    """x: (B, T, idim), x_mask: (B, 1, T) or None. Returns (out, out_mask)."""
    B, T, idim = x.shape
    w1, b1, w2, b2, wl, bl = (params[k] for k in ("w1", "b1", "w2", "b2", "wl", "bl"))
    odim = w1.shape[0]
    if T < 7:
        raise ValueError(f"time dimension must be >= 7 (got {T}); "
                         "Conv1dSubsampling3 output length would be <= 0")
    T1 = T - 2                      # after Conv1d(k=3, s=1)
    T2 = (T1 - 5) // 3 + 1          # after Conv1d(k=5, s=3)
    out_dtype = out_dtype or x.dtype
    xscale = math.sqrt(odim)

    # PyTorch Conv1d weight (O, I, W) -> per-tap GEMM weights (W, I, O);
    # Linear (O, I) -> (I, O); sqrt(odim) PE scale folded into the linear params.
    w1r = jnp.transpose(w1, (2, 1, 0)).astype(compute_dtype)      # (3, idim, odim)
    w2r = jnp.transpose(w2, (2, 1, 0)).astype(compute_dtype)      # (5, odim, odim)
    wlr = (wl.T * xscale).astype(compute_dtype)                   # (odim, odim)
    b1r = b1.reshape(1, odim).astype(jnp.float32)
    b2r = b2.reshape(1, odim).astype(jnp.float32)
    blr = (bl * xscale).reshape(1, odim).astype(jnp.float32)

    # Batch-invariant sinusoidal PE table, computed ONCE outside the kernel
    # (constant index_map below -> fetched once, no per-step EUP work).
    pos = jnp.arange(T2, dtype=jnp.float32)[:, None]
    div = jnp.exp(jnp.arange(0, odim, 2, dtype=jnp.float32)
                  * (-math.log(10000.0) / odim))
    pe = jnp.zeros((T2, odim), jnp.float32)
    pe = pe.at[:, 0::2].set(jnp.sin(pos * div))
    pe = pe.at[:, 1::2].set(jnp.cos(pos * div))

    xc = x.astype(compute_dtype)   # cast once; kernel has no per-dot astype on inputs

    # Scoped-VMEM estimate (double-buffered I/O + weights + scratch + live f32
    # accumulators); raise the limit above the 16/32 MiB defaults when needed,
    # capped below v7x's 64 MiB physical VMEM.
    isz = lambda dt: jnp.dtype(dt).itemsize
    est = (2 * T * idim * isz(compute_dtype)                        # x block
           + 2 * T2 * odim * isz(out_dtype)                         # out block
           + 2 * T2 * odim * 4                                      # pe table
           + 2 * (3 * idim + 6 * odim) * odim * isz(compute_dtype)  # weights
           + 2 * 3 * odim * 4                                       # biases
           + T1 * odim * isz(compute_dtype)                         # h1 scratch
           + (T1 + 2 * T2) * odim * 4)                              # live f32 accs
    vmem_limit = int(min(max(2 * est, 32 << 20), 64 << 20))

    kernel = functools.partial(_fused_subsample3_kernel, t1=T1, t2=T2,
                               compute_dtype=compute_dtype)

    out = pl.pallas_call(
        kernel,
        out_shape=jax.ShapeDtypeStruct((B, T2, odim), out_dtype),
        grid=(B,),
        in_specs=[
            pl.BlockSpec((None, T, idim), lambda b: (b, 0, 0)),   # x (batch squeezed)
            # Constant index_maps -> weights / biases / PE are DMA'd once and reused.
            pl.BlockSpec((3, idim, odim), lambda b: (0, 0, 0)),   # w1 per-tap GEMM form
            pl.BlockSpec((1, odim), lambda b: (0, 0)),            # b1
            pl.BlockSpec((5, odim, odim), lambda b: (0, 0, 0)),   # w2 per-tap GEMM form
            pl.BlockSpec((1, odim), lambda b: (0, 0)),            # b2
            pl.BlockSpec((odim, odim), lambda b: (0, 0)),         # wl (xscale folded)
            pl.BlockSpec((1, odim), lambda b: (0, 0)),            # bl (xscale folded)
            pl.BlockSpec((T2, odim), lambda b: (0, 0)),           # pe table
        ],
        out_specs=pl.BlockSpec((None, T2, odim), lambda b: (b, 0, 0)),
        scratch_shapes=[
            pltpu.VMEM((T1, odim), compute_dtype),   # conv1 activation (on-chip, bf16)
        ],
        compiler_params=pltpu.CompilerParams(
            dimension_semantics=("parallel",),
            vmem_limit_bytes=vmem_limit),
    )(xc, w1r, b1r, w2r, b2r, wlr, blr, pe)

    if x_mask is None:
        return out, None
    return out, x_mask[:, :, :-2:1][:, :, :-4:3]


if __name__ == "__main__":
    B, T, idim, odim = 2, 32, 16, 32
    key = jax.random.PRNGKey(0)
    ks = jax.random.split(key, 8)

    def u(k, shape, fan_in):
        bound = 1.0 / math.sqrt(fan_in)
        return jax.random.uniform(k, shape, jnp.float32, -bound, bound)

    # Parameter shapes follow the module's __init__ (PyTorch conventions).
    params = dict(
        w1=u(ks[0], (odim, idim, 3), idim * 3),   # Conv1d(idim, odim, 3, 1).weight
        b1=u(ks[1], (odim,), idim * 3),
        w2=u(ks[2], (odim, odim, 5), odim * 5),   # Conv1d(odim, odim, 5, 3).weight
        b2=u(ks[3], (odim,), odim * 5),
        wl=u(ks[4], (odim, odim), odim),          # Linear(odim, odim).weight
        bl=u(ks[5], (odim,), odim),
    )
    x = jax.random.normal(ks[6], (B, T, idim), jnp.float32)   # (#batch, time, idim)
    x_mask = jnp.ones((B, 1, T), dtype=bool)                  # (#batch, 1, time)

    # Pure-JAX reference (f32).
    def ref(xr):
        y = jax.lax.conv_general_dilated(
            xr, jnp.transpose(params["w1"], (2, 1, 0)), (1,), "VALID",
            dimension_numbers=("NWC", "WIO", "NWC")) + params["b1"]
        y = jnp.maximum(y, 0.0)
        y = jax.lax.conv_general_dilated(
            y, jnp.transpose(params["w2"], (2, 1, 0)), (3,), "VALID",
            dimension_numbers=("NWC", "WIO", "NWC")) + params["b2"]
        y = jnp.maximum(y, 0.0)
        y = y @ params["wl"].T + params["bl"]
        t2 = y.shape[1]
        pos = jnp.arange(t2, dtype=jnp.float32)[:, None]
        div = jnp.exp(jnp.arange(0, odim, 2, dtype=jnp.float32)
                      * (-math.log(10000.0) / odim))
        pe = jnp.zeros((t2, odim), jnp.float32)
        pe = pe.at[:, 0::2].set(jnp.sin(pos * div))
        pe = pe.at[:, 1::2].set(jnp.cos(pos * div))
        return y * math.sqrt(odim) + pe

    T2 = (T - 2 - 5) // 3 + 1
    ref_out = ref(x)

    # f32 MXU path (strict tolerance).
    out_f32, out_mask = conv1d_subsampling3(x, x_mask, params,
                                            compute_dtype=jnp.float32)
    out_f32 = jax.block_until_ready(out_f32)
    assert out_f32.shape == (B, T2, odim)
    assert out_mask.shape == (B, 1, T2)
    assert jnp.allclose(out_f32, ref_out, atol=2e-3, rtol=2e-3)

    # bf16 MXU path (native on v5e/v6e/v7x; f32 accumulation), loose tolerance.
    out_bf16, _ = conv1d_subsampling3(x, x_mask, params,
                                      compute_dtype=jnp.bfloat16)
    out_bf16 = jax.block_until_ready(out_bf16)
    assert out_bf16.shape == (B, T2, odim)
    assert jnp.allclose(out_bf16, ref_out, atol=1.5e-1, rtol=1e-1)

    print("KERNEL_OK")
</pallas_src>

<mosaic_0001>
module attributes {stable_mosaic.version = 11 : i64} {
  func.func @_fused_subsample3_kernel(%arg0: i32, %arg1: memref<1x32x16xf32, #tpu.memory_space<vmem>>, %arg2: memref<3x16x32xf32, #tpu.memory_space<vmem>>, %arg3: memref<1x32xf32, #tpu.memory_space<vmem>>, %arg4: memref<5x32x32xf32, #tpu.memory_space<vmem>>, %arg5: memref<1x32xf32, #tpu.memory_space<vmem>>, %arg6: memref<32x32xf32, #tpu.memory_space<vmem>>, %arg7: memref<1x32xf32, #tpu.memory_space<vmem>>, %arg8: memref<9x32xf32, #tpu.memory_space<vmem>>, %arg9: memref<1x9x32xf32, #tpu.memory_space<vmem>>, %arg10: memref<30x32xf32, #tpu.memory_space<vmem>>) attributes {dimension_semantics = [#tpu.dimension_semantics<parallel>], iteration_bounds = array<i64: 2>, scalar_prefetch = 0 : i64, scratch_operands = 1 : i64, tpu.core_type = #tpu.core_type<tc>, window_params = [{transform_indices = @transform_0, window_bounds = array<i64: 1, 32, 16>}, {pipeline_mode = #tpu.pipeline_mode<synchronous>, transform_indices = @transform_1, window_bounds = array<i64: 3, 16, 32>}, {pipeline_mode = #tpu.pipeline_mode<synchronous>, transform_indices = @transform_2, window_bounds = array<i64: 1, 32>}, {pipeline_mode = #tpu.pipeline_mode<synchronous>, transform_indices = @transform_3, window_bounds = array<i64: 5, 32, 32>}, {pipeline_mode = #tpu.pipeline_mode<synchronous>, transform_indices = @transform_4, window_bounds = array<i64: 1, 32>}, {pipeline_mode = #tpu.pipeline_mode<synchronous>, transform_indices = @transform_5, window_bounds = array<i64: 32, 32>}, {pipeline_mode = #tpu.pipeline_mode<synchronous>, transform_indices = @transform_6, window_bounds = array<i64: 1, 32>}, {pipeline_mode = #tpu.pipeline_mode<synchronous>, transform_indices = @transform_7, window_bounds = array<i64: 9, 32>}, {transform_indices = @transform_8, window_bounds = array<i64: 1, 9, 32>}]} {
    %c0 = arith.constant 0 : index
    %c0_0 = arith.constant 0 : index
    %c0_1 = arith.constant 0 : index
    %0 = vector.load %arg1[%c0, %c0_0, %c0_1] : memref<1x32x16xf32, #tpu.memory_space<vmem>>, vector<1x30x16xf32>
    %1 = vector.shape_cast %0 : vector<1x30x16xf32> to vector<30x16xf32>
    %c0_2 = arith.constant 0 : index
    %c0_3 = arith.constant 0 : index
    %c0_4 = arith.constant 0 : index
    %2 = vector.load %arg2[%c0_2, %c0_3, %c0_4] : memref<3x16x32xf32, #tpu.memory_space<vmem>>, vector<1x16x32xf32>
    %3 = vector.shape_cast %2 : vector<1x16x32xf32> to vector<16x32xf32>
    %cst = arith.constant dense<0.000000e+00> : vector<30x32xf32>
    %4 = tpu.matmul %1, %3, %cst {dimension_numbers = #tpu.dot_dimension_numbers<[1], [0], [0], [1], [0, 0, 1, 1], [], []>} : vector<30x16xf32>, vector<16x32xf32>, vector<30x32xf32> -> vector<30x32xf32>
    %c0_5 = arith.constant 0 : index
    %c1 = arith.constant 1 : index
    %c0_6 = arith.constant 0 : index
    %5 = vector.load %arg1[%c0_5, %c1, %c0_6] : memref<1x32x16xf32, #tpu.memory_space<vmem>>, vector<1x30x16xf32>
    %6 = vector.shape_cast %5 : vector<1x30x16xf32> to vector<30x16xf32>
    %c1_7 = arith.constant 1 : index
    %c0_8 = arith.constant 0 : index
    %c0_9 = arith.constant 0 : index
    %7 = vector.load %arg2[%c1_7, %c0_8, %c0_9] : memref<3x16x32xf32, #tpu.memory_space<vmem>>, vector<1x16x32xf32>
    %8 = vector.shape_cast %7 : vector<1x16x32xf32> to vector<16x32xf32>
    %cst_10 = arith.constant dense<0.000000e+00> : vector<30x32xf32>
    %9 = tpu.matmul %6, %8, %cst_10 {dimension_numbers = #tpu.dot_dimension_numbers<[1], [0], [0], [1], [0, 0, 1, 1], [], []>} : vector<30x16xf32>, vector<16x32xf32>, vector<30x32xf32> -> vector<30x32xf32>
    %10 = arith.addf %4, %9 : vector<30x32xf32>
    %c0_11 = arith.constant 0 : index
    %c2 = arith.constant 2 : index
    %c0_12 = arith.constant 0 : index
    %11 = vector.load %arg1[%c0_11, %c2, %c0_12] : memref<1x32x16xf32, #tpu.memory_space<vmem>>, vector<1x30x16xf32>
    %12 = vector.shape_cast %11 : vector<1x30x16xf32> to vector<30x16xf32>
    %c2_13 = arith.constant 2 : index
    %c0_14 = arith.constant 0 : index
    %c0_15 = arith.constant 0 : index
    %13 = vector.load %arg2[%c2_13, %c0_14, %c0_15] : memref<3x16x32xf32, #tpu.memory_space<vmem>>, vector<1x16x32xf32>
    %14 = vector.shape_cast %13 : vector<1x16x32xf32> to vector<16x32xf32>
    %cst_16 = arith.constant dense<0.000000e+00> : vector<30x32xf32>
    %15 = tpu.matmul %12, %14, %cst_16 {dimension_numbers = #tpu.dot_dimension_numbers<[1], [0], [0], [1], [0, 0, 1, 1], [], []>} : vector<30x16xf32>, vector<16x32xf32>, vector<30x32xf32> -> vector<30x32xf32>
    %16 = arith.addf %10, %15 : vector<30x32xf32>
    %c0_17 = arith.constant 0 : index
    %c0_18 = arith.constant 0 : index
    %17 = vector.load %arg3[%c0_17, %c0_18] : memref<1x32xf32, #tpu.memory_space<vmem>>, vector<1x32xf32>
    %18 = vector.broadcast %17 : vector<1x32xf32> to vector<30x32xf32>
    %19 = arith.addf %16, %18 : vector<30x32xf32>
    %cst_19 = arith.constant 0.000000e+00 : f32
    %20 = vector.broadcast %cst_19 : f32 to vector<30x32xf32>
    %21 = arith.maximumf %19, %20 : vector<30x32xf32>
    %c0_20 = arith.constant 0 : index
    %c0_21 = arith.constant 0 : index
    %22 = vector.load %arg10[%c0_20, %c0_21] : memref<30x32xf32, #tpu.memory_space<vmem>>, vector<30x32xf32>
    tpu.vector_store %arg10[%c0_20, %c0_21], %21 {strides = array<i32>} : memref<30x32xf32, #tpu.memory_space<vmem>>, vector<30x32xf32>,
    %c0_22 = arith.constant 0 : index
    %c0_23 = arith.constant 0 : index
    %23 = tpu.strided_load %arg10[%c0_22, %c0_23] {strides = array<i32: 3, 1>} : memref<30x32xf32, #tpu.memory_space<vmem>>, vector<9x32xf32>
    %c0_24 = arith.constant 0 : index
    %c0_25 = arith.constant 0 : index
    %c0_26 = arith.constant 0 : index
    %24 = vector.load %arg4[%c0_24, %c0_25, %c0_26] : memref<5x32x32xf32, #tpu.memory_space<vmem>>, vector<1x32x32xf32>
    %25 = vector.shape_cast %24 : vector<1x32x32xf32> to vector<32x32xf32>
    %cst_27 = arith.constant dense<0.000000e+00> : vector<9x32xf32>
    %26 = tpu.matmul %23, %25, %cst_27 {dimension_numbers = #tpu.dot_dimension_numbers<[1], [0], [0], [1], [0, 0, 1, 1], [], []>} : vector<9x32xf32>, vector<32x32xf32>, vector<9x32xf32> -> vector<9x32xf32>
    %c1_28 = arith.constant 1 : index
    %c0_29 = arith.constant 0 : index
    %27 = tpu.strided_load %arg10[%c1_28, %c0_29] {strides = array<i32: 3, 1>} : memref<30x32xf32, #tpu.memory_space<vmem>>, vector<9x32xf32>
    %c1_30 = arith.constant 1 : index
    %c0_31 = arith.constant 0 : index
    %c0_32 = arith.constant 0 : index
    %28 = vector.load %arg4[%c1_30, %c0_31, %c0_32] : memref<5x32x32xf32, #tpu.memory_space<vmem>>, vector<1x32x32xf32>
    %29 = vector.shape_cast %28 : vector<1x32x32xf32> to vector<32x32xf32>
    %cst_33 = arith.constant dense<0.000000e+00> : vector<9x32xf32>
    %30 = tpu.matmul %27, %29, %cst_33 {dimension_numbers = #tpu.dot_dimension_numbers<[1], [0], [0], [1], [0, 0, 1, 1], [], []>} : vector<9x32xf32>, vector<32x32xf32>, vector<9x32xf32> -> vector<9x32xf32>
    %31 = arith.addf %26, %30 : vector<9x32xf32>
    %c2_34 = arith.constant 2 : index
    %c0_35 = arith.constant 0 : index
    %32 = tpu.strided_load %arg10[%c2_34, %c0_35] {strides = array<i32: 3, 1>} : memref<30x32xf32, #tpu.memory_space<vmem>>, vector<9x32xf32>
    %c2_36 = arith.constant 2 : index
    %c0_37 = arith.constant 0 : index
    %c0_38 = arith.constant 0 : index
    %33 = vector.load %arg4[%c2_36, %c0_37, %c0_38] : memref<5x32x32xf32, #tpu.memory_space<vmem>>, vector<1x32x32xf32>
    %34 = vector.shape_cast %33 : vector<1x32x32xf32> to vector<32x32xf32>
    %cst_39 = arith.constant dense<0.000000e+00> : vector<9x32xf32>
    %35 = tpu.matmul %32, %34, %cst_39 {dimension_numbers = #tpu.dot_dimension_numbers<[1], [0], [0], [1], [0, 0, 1, 1], [], []>} : vector<9x32xf32>, vector<32x32xf32>, vector<9x32xf32> -> vector<9x32xf32>
    %36 = arith.addf %31, %35 : vector<9x32xf32>
    %c3 = arith.constant 3 : index
    %c0_40 = arith.constant 0 : index
    %37 = tpu.strided_load %arg10[%c3, %c0_40] {strides = array<i32: 3, 1>} : memref<30x32xf32, #tpu.memory_space<vmem>>, vector<9x32xf32>
    %c3_41 = arith.constant 3 : index
    %c0_42 = arith.constant 0 : index
    %c0_43 = arith.constant 0 : index
    %38 = vector.load %arg4[%c3_41, %c0_42, %c0_43] : memref<5x32x32xf32, #tpu.memory_space<vmem>>, vector<1x32x32xf32>
    %39 = vector.shape_cast %38 : vector<1x32x32xf32> to vector<32x32xf32>
    %cst_44 = arith.constant dense<0.000000e+00> : vector<9x32xf32>
    %40 = tpu.matmul %37, %39, %cst_44 {dimension_numbers = #tpu.dot_dimension_numbers<[1], [0], [0], [1], [0, 0, 1, 1], [], []>} : vector<9x32xf32>, vector<32x32xf32>, vector<9x32xf32> -> vector<9x32xf32>
    %41 = arith.addf %36, %40 : vector<9x32xf32>
    %c4 = arith.constant 4 : index
    %c0_45 = arith.constant 0 : index
    %42 = tpu.strided_load %arg10[%c4, %c0_45] {strides = array<i32: 3, 1>} : memref<30x32xf32, #tpu.memory_space<vmem>>, vector<9x32xf32>
    %c4_46 = arith.constant 4 : index
    %c0_47 = arith.constant 0 : index
    %c0_48 = arith.constant 0 : index
    %43 = vector.load %arg4[%c4_46, %c0_47, %c0_48] : memref<5x32x32xf32, #tpu.memory_space<vmem>>, vector<1x32x32xf32>
    %44 = vector.shape_cast %43 : vector<1x32x32xf32> to vector<32x32xf32>
    %cst_49 = arith.constant dense<0.000000e+00> : vector<9x32xf32>
    %45 = tpu.matmul %42, %44, %cst_49 {dimension_numbers = #tpu.dot_dimension_numbers<[1], [0], [0], [1], [0, 0, 1, 1], [], []>} : vector<9x32xf32>, vector<32x32xf32>, vector<9x32xf32> -> vector<9x32xf32>
    %46 = arith.addf %41, %45 : vector<9x32xf32>
    %c0_50 = arith.constant 0 : index
    %c0_51 = arith.constant 0 : index
    %47 = vector.load %arg5[%c0_50, %c0_51] : memref<1x32xf32, #tpu.memory_space<vmem>>, vector<1x32xf32>
    %48 = vector.broadcast %47 : vector<1x32xf32> to vector<9x32xf32>
    %49 = arith.addf %46, %48 : vector<9x32xf32>
    %cst_52 = arith.constant 0.000000e+00 : f32
    %50 = vector.broadcast %cst_52 : f32 to vector<9x32xf32>
    %51 = arith.maximumf %49, %50 : vector<9x32xf32>
    %c0_53 = arith.constant 0 : index
    %c0_54 = arith.constant 0 : index
    %52 = vector.load %arg6[%c0_53, %c0_54] : memref<32x32xf32, #tpu.memory_space<vmem>>, vector<32x32xf32>
    %cst_55 = arith.constant dense<0.000000e+00> : vector<9x32xf32>
    %53 = tpu.matmul %51, %52, %cst_55 {dimension_numbers = #tpu.dot_dimension_numbers<[1], [0], [0], [1], [0, 0, 1, 1], [], []>} : vector<9x32xf32>, vector<32x32xf32>, vector<9x32xf32> -> vector<9x32xf32>
    %c0_56 = arith.constant 0 : index
    %c0_57 = arith.constant 0 : index
    %54 = vector.load %arg7[%c0_56, %c0_57] : memref<1x32xf32, #tpu.memory_space<vmem>>, vector<1x32xf32>
    %55 = vector.broadcast %54 : vector<1x32xf32> to vector<9x32xf32>
    %56 = arith.addf %53, %55 : vector<9x32xf32>
    %c0_58 = arith.constant 0 : index
    %c0_59 = arith.constant 0 : index
    %57 = vector.load %arg8[%c0_58, %c0_59] : memref<9x32xf32, #tpu.memory_space<vmem>>, vector<9x32xf32>
    %58 = arith.addf %56, %57 : vector<9x32xf32>
    %c0_60 = arith.constant 0 : index
    %c0_61 = arith.constant 0 : index
    %c0_62 = arith.constant 0 : index
    %59 = vector.load %arg9[%c0_60, %c0_61, %c0_62] : memref<1x9x32xf32, #tpu.memory_space<vmem>>, vector<1x9x32xf32>
    %60 = vector.shape_cast %59 : vector<1x9x32xf32> to vector<9x32xf32>
    %61 = vector.shape_cast %58 : vector<9x32xf32> to vector<1x9x32xf32>
    tpu.vector_store %arg9[%c0_60, %c0_61, %c0_62], %61 {strides = array<i32>} : memref<1x9x32xf32, #tpu.memory_space<vmem>>, vector<1x9x32xf32>,
    return
  }
  func.func @transform_0(%arg0: i32) -> (i32, i32, i32) {
    %c0_i32 = arith.constant 0 : i32
    %c0_i32_0 = arith.constant 0 : i32
    %c0_i32_1 = arith.constant 0 : i32
    return %arg0, %c0_i32, %c0_i32_0 : i32, i32, i32
  }
  func.func @transform_1(%arg0: i32) -> (i32, i32, i32) {
    %c0_i32 = arith.constant 0 : i32
    %c0_i32_0 = arith.constant 0 : i32
    %c0_i32_1 = arith.constant 0 : i32
    %c0_i32_2 = arith.constant 0 : i32
    return %c0_i32, %c0_i32_0, %c0_i32_1 : i32, i32, i32
  }
  func.func @transform_2(%arg0: i32) -> (i32, i32) {
    %c0_i32 = arith.constant 0 : i32
    %c0_i32_0 = arith.constant 0 : i32
    %c0_i32_1 = arith.constant 0 : i32
    return %c0_i32, %c0_i32_0 : i32, i32
  }
  func.func @transform_3(%arg0: i32) -> (i32, i32, i32) {
    %c0_i32 = arith.constant 0 : i32
    %c0_i32_0 = arith.constant 0 : i32
    %c0_i32_1 = arith.constant 0 : i32
    %c0_i32_2 = arith.constant 0 : i32
    return %c0_i32, %c0_i32_0, %c0_i32_1 : i32, i32, i32
  }
  func.func @transform_4(%arg0: i32) -> (i32, i32) {
    %c0_i32 = arith.constant 0 : i32
    %c0_i32_0 = arith.constant 0 : i32
    %c0_i32_1 = arith.constant 0 : i32
    return %c0_i32, %c0_i32_0 : i32, i32
  }
  func.func @transform_5(%arg0: i32) -> (i32, i32) {
    %c0_i32 = arith.constant 0 : i32
    %c0_i32_0 = arith.constant 0 : i32
    %c0_i32_1 = arith.constant 0 : i32
    return %c0_i32, %c0_i32_0 : i32, i32
  }
  func.func @transform_6(%arg0: i32) -> (i32, i32) {
    %c0_i32 = arith.constant 0 : i32
    %c0_i32_0 = arith.constant 0 : i32
    %c0_i32_1 = arith.constant 0 : i32
    return %c0_i32, %c0_i32_0 : i32, i32
  }
  func.func @transform_7(%arg0: i32) -> (i32, i32) {
    %c0_i32 = arith.constant 0 : i32
    %c0_i32_0 = arith.constant 0 : i32
    %c0_i32_1 = arith.constant 0 : i32
    return %c0_i32, %c0_i32_0 : i32, i32
  }
  func.func @transform_8(%arg0: i32) -> (i32, i32, i32) {
    %c0_i32 = arith.constant 0 : i32
    %c0_i32_0 = arith.constant 0 : i32
    %c0_i32_1 = arith.constant 0 : i32
    return %arg0, %c0_i32, %c0_i32_0 : i32, i32, i32
  }
}

</mosaic_0001>

<bundles_post_ra>
// kernel: tpu_custom_call.1
= control target key start
LH: loop header
LB: loop body
LE: loop exit
PB: predicated region body
PF: predicated region fallthrough
CT: control target
= control target key end

     0   :  { %13 = vsyncpa [#allocation4], 0  ;;  %s959_s27 = smov 0   ;;  %s1070_s0 = inlined_call_operand.vmem [shape: f32[2,32,16], index: 0, kind: input, shape index: {}]   ;;  %s1071_s1 = inlined_call_operand.vmem [shape: f32[3,16,32], index: 1, kind: input, shape index: {}]   ;;  %s1072_s2 = inlined_call_operand.vmem [shape: f32[1,32], index: 2, kind: input, shape index: {}]   ;;  %s1073_s3 = inlined_call_operand.hbm [shape: f32[5,32,32], index: 3, kind: input, shape index: {}]   ;;  %s1074_s4 = inlined_call_operand.vmem [shape: f32[1,32], index: 4, kind: input, shape index: {}]   ;;  %s1075_s5 = inlined_call_operand.vmem [shape: f32[32,32], index: 5, kind: input, shape index: {}]   ;;  %s1076_s6 = inlined_call_operand.vmem [shape: f32[1,32], index: 6, kind: input, shape index: {}]   ;;  %s1077_s7 = inlined_call_operand.vmem [shape: f32[9,32], index: 7, kind: input, shape index: {}]   ;;  %s1078_s8 = inlined_call_operand.vmem [shape: f32[2,9,32], index: 8, kind: output, shape index: {}]  }
   0x1 LB: > { %s240_s30 = sshll.u32 %s1073_s3, 4  ;;  %s802_s9 = sadd.s32 4294967295, %s909_s27   ;;  %s909_s27 = sphi %s959_s27, %s19_s27   ;;  %s241_s30 = int_to_ptr.hbm [resolvable:$true] %s240_s30 }
   0x2   : > { %p804_p0 = scmp.ge.s32.totalorder %s909_s27, 1  ;;  %p223_p1 = scmp.lt.s32.totalorder %s909_s27, 3 }
   0x3   : > { %p853_p2 = scmp.eq.s32.totalorder %s802_s9, 0  ;;  %s911_s10 = smov [#allocation3]  }
   0x4   : > { %p224_p3 = pnand %p804_p0, %p223_p1  ;;  %s242_s11 = sshll.u32 %s911_s10, 4  ;;  %s243_s11 = int_to_ptr.vmem [resolvable:$true] %s242_s11 }
   0x5   : > { %s912_s12 = smov 128   ;;  %s913_s13 = smov 8  }
   0x6   : > { %p849_p4 = pneg %p224_p3  ;;  %278 = sbr.rel (%p224_p3) target bundleno = 485 (0x1e5), region = 52 }
   0x8   : > { %p850_p5 = pnand %p853_p2, %p849_p4 }
   0xa   : > { %852 = dma.hbm_to_vmem [thread:$0]  (!%p850_p5), %s241_s30, 2560, %s243_s11, [#allocation4], %s912_s12, %s912_s12, %s913_s13  }
   0xb   : > { %904 = dma.done.wait (%p853_p2), [#allocation4], 2560  }
   0xc   : > { %906 = vsyncadd (%p853_p2), [#allocation4], 4294964736  ;;  %p313_p6 = scmp.lt.s32.totalorder %s802_s9, 1  ;;  %v824_v0 = vld [vmem:[%s1071_s1 + $0x28] sm:$0xff]  ;;  %v823_v1 = vld [vmem:[%s1071_s1 + $0x20] sm:$0xff]  ;;  %vm336_vm0 = vcmask 130048  }
   0xd   : > { %452 = vmatpush.msra.mxu2 %v824_v0  ;;  %v814_v3 = vld [vmem:[%s1071_s1 + $0x18] sm:$0xff]  ;;  %v328_v4 = vld [vmem:[%s1071_s1 + $0x8] sm:$0xff]  ;;  %v813_v5 = vld [vmem:[%s1071_s1 + $0x10] sm:$0xff]  ;;  %vm483_vm1 = vcmask 261120   ;;  %vm487_vm2 = vcmask 259072   ;;  %vm733_vm3 = vcmask 253952  }
   0xe   : > { %s1080_s9 = smov (!%p313_p6, %s802_s9), 1  ;;  %363 = vmatpush.msra.mxu0 %v814_v3  ;;  %404 = vmatpush.msra.mxu1 %v328_v4  ;;  %v327_v6 = vld [vmem:[%s1071_s1] sm:$0xff]  ;;  %v651_v18 = vld [vmem:[#allocation3 + $0x98] sm:$0xff]  ;;  %v503_v21 = vld [vmem:[#allocation3 + $0x30] sm:$0xff] }
   0xf   : > { %s843_s14 = sshll.u32 %s1080_s9, 5  ;;  %453 = vmatpush.msra.mxu2 %v823_v1  ;;  %v571_v19 = vld [vmem:[#allocation3 + $0x58] sm:$0xff]  ;;  %v570_v22 = vld [vmem:[#allocation3 + $0x50] sm:$0xff]  ;;  %v502_v24 = vld [vmem:[#allocation3 + $0x28] sm:$0xff]  ;;  %s844_s24 = sshll.u32 %s1080_s9, 4 }
  0x10   : > { %s976_s17 = scalar_lea.vmem %s1070_s0, %s843_s14  ;;  %364 = vmatpush.msra.mxu0 %v813_v5  ;;  %405 = vmatpush.msra.mxu1 %v327_v6  ;;  %v504_v20 = vld [vmem:[#allocation3 + $0x38] sm:$0xff]  ;;  %v569_v25 = vld [vmem:[#allocation3 + $0x48] sm:$0xff]  ;;  %v501_v28 = vld [vmem:[#allocation3 + $0x20] sm:$0xff]  ;;  %s322_s30 = scalar_lea.vmem %s1078_s8, %s844_s24 }
  0x11   : > { %v419_v2 = vld [vmem:[%s976_s17 + $0x2] sm:$0xff]  ;;  %v420_v9 = vld [vmem:[%s976_s17 + $0xa] sm:$0xff]  ;;  %v421_v12 = vld [vmem:[%s976_s17 + $0x12] sm:$0xff]  ;;  %670 = vmatpush.msrb.mxu2 %v651_v18  ;;  %523 = vmatpush.msra.mxu3 %v504_v20 }
  0x12   : > { %v329_v7 = vld [vmem:[%s976_s17 + $0x1] sm:$0xff]  ;;  %825 = vmatmul.msk.f32.vlgmr.msra.gmra.mxu2 %vm336_vm0, %v419_v2  ;;  %v330_v10 = vld [vmem:[%s976_s17 + $0x9] sm:$0xff]  ;;  %v331_v13 = vld [vmem:[%s976_s17 + $0x11] sm:$0xff]  ;;  %590 = vmatpush.msrb.mxu0 %v571_v19 }
  0x13   : > { %v323_v8 = vld [vmem:[%s976_s17] sm:$0xff]  ;;  %815 = vmatmul.msk.f32.vlgmr.msra.gmra.mxu0 %vm336_vm0, %v329_v7  ;;  %v324_v11 = vld [vmem:[%s976_s17 + $0x8] sm:$0xff]  ;;  %v325_v14 = vld [vmem:[%s976_s17 + $0x10] sm:$0xff]  ;;  %524 = vmatpush.msra.mxu3 %v503_v21 }
  0x14   : > { %819 = vmatmul.msk.f32.vlgmr.msra.gmra.mxu1 %vm336_vm0, %v323_v8  ;;  %v422_v15 = vld [vmem:[%s976_s17 + $0x1a] sm:$0x3f]  ;;  %591 = vmatpush.msrb.mxu0 %v570_v22  ;;  %v568_v29 = vld [vmem:[#allocation3 + $0x40] sm:$0xff]  ;;  %v650_v32 = vld [vmem:[#allocation3 + $0x90] sm:$0xff] }
  0x15   : > { %v332_v16 = vld [vmem:[%s976_s17 + $0x19] sm:$0x3f]  ;;  %525 = vmatpush.msra.mxu3 %v502_v24  ;;  %v866_v30 = vld [vmem:[%s1072_s2] ss:$0 sm:$0xff]  ;;  %671 = vmatpush.msrb.mxu2 %v650_v32  ;;  %v610_v35 = vld [vmem:[#allocation3 + $0x70] sm:$0xff] }
  0x16   : > { %v326_v17 = vld [vmem:[%s976_s17 + $0x18] sm:$0x3f]  ;;  %592 = vmatpush.msrb.mxu0 %v569_v25  ;;  %v494_v36 = vld [vmem:[#allocation3 + $0x10] sm:$0xff]  ;;  %v609_v38 = vld [vmem:[#allocation3 + $0x68] sm:$0xff] }
  0x17   : > { %v611_v31 = vld [vmem:[#allocation3 + $0x78] sm:$0xff]  ;;  %526 = vmatpush.msra.mxu3 %v501_v28  ;;  %v649_v39 = vld [vmem:[#allocation3 + $0x88] sm:$0xff]  ;;  %v648_v40 = vld [vmem:[#allocation3 + $0x80] sm:$0xff] }
  0x18   : > { %593 = vmatpush.msrb.mxu0 %v568_v29  ;;  %v495_v33 = vld [vmem:[#allocation3 + $0x18] sm:$0xff]  ;;  %630 = vmatpush.msrb.mxu1 %v611_v31  ;;  %v608_v43 = vld [vmem:[#allocation3 + $0x60] sm:$0xff]  ;;  %v493_v47 = vld [vmem:[#allocation3 + $0x8] sm:$0xff] }
  0x19   : > { %552 = vmatpush.msrb.mxu3 %v495_v33  ;;  %672 = vmatpush.msrb.mxu2 %v649_v39  ;;  %v492_v49 = vld [vmem:[#allocation3] sm:$0xff] }
  0x1a   : > { %826 = vmatmul.msk.f32.gmra.mxu2 %vm336_vm0, %v420_v9  ;;  %631 = vmatpush.msrb.mxu1 %v610_v35 }
  0x1b   : > { %816 = vmatmul.msk.f32.gmra.mxu0 %vm336_vm0, %v330_v10  ;;  %553 = vmatpush.msrb.mxu3 %v494_v36 }
  0x1c   : > { %820 = vmatmul.msk.f32.gmra.mxu1 %vm336_vm0, %v324_v11  ;;  %673 = vmatpush.msrb.mxu2 %v648_v40  ;;  %v868_v40 = vld [vmem:[%s1076_s6] ss:$0 sm:$0xff] }
  0x1d   : > { %632 = vmatpush.msrb.mxu1 %v609_v38  ;;  %554 = vmatpush.msrb.mxu3 %v493_v47 }
  0x1f   : > { %633 = vmatpush.msrb.mxu1 %v608_v43  ;;  %555 = vmatpush.msrb.mxu3 %v492_v49 }
  0x22   : > { %827 = vmatmul.msk.f32.gmra.mxu2 %vm336_vm0, %v421_v12 }
  0x23   : > { %817 = vmatmul.msk.f32.gmra.mxu0 %vm336_vm0, %v331_v13  ;;  %v694_v13 = vld [vmem:[%s1075_s5 + $0x18] sm:$0xff] }
  0x24   : > { %821 = vmatmul.msk.f32.gmra.mxu1 %vm336_vm0, %v325_v14  ;;  %v693_v14 = vld [vmem:[%s1075_s5 + $0x10] sm:$0xff] }
  0x2a   : > { %828 = vmatmul.msk.f32.gmra.mxu2 %vm336_vm0, %v422_v15  ;;  %v692_v15 = vld [vmem:[%s1075_s5 + $0x8] sm:$0xff] }
  0x2b   : > { %818 = vmatmul.msk.f32.gmra.mxu0 %vm336_vm0, %v332_v16  ;;  %v691_v16 = vld [vmem:[%s1075_s5] sm:$0xff] }
  0x2c   : > { %822 = vmatmul.msk.f32.gmra.mxu1 %vm336_vm0, %v326_v17 }
  0x90   : > { %v366_v23 = vpop.f32.mrf.mxu0 }
  0x91   : > { %v407_v26 = vpop.f32.mrf.mxu1 }
  0x92   : > { %v408_v27 = vadd.f32 %v407_v26, %v366_v23  ;;  %v867_v26 = vld [vmem:[%s1074_s4] ss:$0 sm:$0xff] }
  0x95   : > { %v455_v34 = vpop.f32.mrf.mxu2 }
  0x96   : > { %v467_v37 = vadd.f32 %v455_v34, %v408_v27 }
  0x98   : > { %v475_v41 = vadd.f32 %v866_v30, %v467_v37  ;;  %v369_v42 = vpop.f32.mrf.mxu0 }
  0x99   : > { %v410_v44 = vpop.f32.mrf.mxu1 }
  0x9a   : > { %v479_v45 = vmax.f32 %v475_v41, 0.0  ;;  %v411_v46 = vadd.f32 %v410_v44, %v369_v42  ;;  %v728_v42 = vld [vmem:[%s1077_s7] sm:$0xff] }
  0x9c   : > { %484 = vst.msk [vmem:[#allocation2] sm:$0xff] %vm483_vm1, %v479_v45 }
  0x9d   : > { %v458_v48 = vpop.f32.mrf.mxu2 }
  0x9e   : > { %v468_v50 = vadd.f32 %v458_v48, %v411_v46  ;;  %v729_v46 = vld [vmem:[%s1077_s7 + $0x8] sm:$0x1] }
  0xa0   : > { %v476_v51 = vadd.f32 %v866_v30, %v468_v50  ;;  %v372_v52 = vpop.f32.mrf.mxu0 }
  0xa1   : > { %v413_v53 = vpop.f32.mrf.mxu1 }
  0xa2   : > { %v480_v54 = vmax.f32 %v476_v51, 0.0  ;;  %v414_v55 = vadd.f32 %v413_v53, %v372_v52 }
  0xa4   : > { %485 = vst.msk [vmem:[#allocation2 + $0x8] sm:$0xff] %vm483_vm1, %v480_v54 }
  0xa5   : > { %v461_v56 = vpop.f32.mrf.mxu2 }
  0xa6   : > { %v469_v57 = vadd.f32 %v461_v56, %v414_v55 }
  0xa8   : > { %v477_v58 = vadd.f32 %v866_v30, %v469_v57  ;;  %v375_v59 = vpop.f32.mrf.mxu0 }
  0xa9   : > { %v416_v60 = vpop.f32.mrf.mxu1 }
  0xaa   : > { %v481_v61 = vmax.f32 %v477_v58, 0.0  ;;  %v417_v62 = vadd.f32 %v416_v60, %v375_v59 }
  0xac   : > { %486 = vst.msk [vmem:[#allocation2 + $0x10] sm:$0xff] %vm483_vm1, %v481_v61 }
  0xad   : > { %v464_v63 = vpop.f32.mrf.mxu2 }
  0xae   : > { %v470_v0 = vadd.f32 %v464_v63, %v417_v62 }
  0xb0   : > { %v478_v1 = vadd.f32 %v866_v30, %v470_v0 }
  0xb2   : > { %v482_v2 = vmax.f32 %v478_v1, 0.0 }
  0xb3   : > { %v497_v3 = vld [vmem:[#allocation2 + $0x1] ss:$3 sm:$0xff]  ;;  %v564_v4 = vld [vmem:[#allocation2 + $0x2] ss:$3 sm:$0xff]  ;;  %v489_v9 = vld [vmem:[#allocation2] ss:$3 sm:$0xff] }
  0xb4   : > { %488 = vst.msk [vmem:[#allocation2 + $0x18] sm:$0x3f] %vm487_vm2, %v482_v2  ;;  %829 = vmatmul.msk.f32.vlgmr.msra.gmra.mxu3 %vm483_vm1, %v497_v3  ;;  %833 = vmatmul.msk.f32.vlgmr.msrb.gmra.mxu0 %vm483_vm1, %v564_v4 }
  0xb5   : > { %717 = vmatpush.msra.mxu3 %v694_v13 }
  0xb7   : > { %718 = vmatpush.msra.mxu3 %v693_v14 }
  0xb9   : > { %719 = vmatpush.msra.mxu3 %v692_v15 }
  0xbb   : > { %v499_v5 = vld [vmem:[#allocation2 + $0x19] ss:$3 sm:$0x1]  ;;  %v566_v6 = vld [vmem:[#allocation2 + $0x1a] ss:$3 sm:$0x1]  ;;  %720 = vmatpush.msra.mxu3 %v691_v16 }
  0xbc   : > { %830 = vmatmul.msk.f32.gmra.mxu3 %vm483_vm1, %v499_v5  ;;  %834 = vmatmul.msk.f32.gmra.mxu0 %vm483_vm1, %v566_v6  ;;  %v604_v7 = vld [vmem:[#allocation2 + $0x3] ss:$3 sm:$0xff]  ;;  %v644_v8 = vld [vmem:[#allocation2 + $0x4] ss:$3 sm:$0xff] }
  0xbd   : > { %835 = vmatmul.msk.f32.vlgmr.msrb.gmra.mxu1 %vm483_vm1, %v604_v7  ;;  %837 = vmatmul.msk.f32.vlgmr.msrb.gmra.mxu2 %vm483_vm1, %v644_v8  ;;  %v606_v10 = vld [vmem:[#allocation2 + $0x1b] ss:$3 sm:$0x1]  ;;  %v646_v11 = vld [vmem:[#allocation2 + $0x1c] ss:$3 sm:$0x1] }
  0xbe   : > { %v491_v12 = vld [vmem:[#allocation2 + $0x18] ss:$3 sm:$0x1] }
  0xc4   : > { %831 = vmatmul.msk.f32.vlgmr.msrb.gmra.mxu3 %vm483_vm1, %v489_v9 }
  0xc5   : > { %836 = vmatmul.msk.f32.gmra.mxu1 %vm483_vm1, %v606_v10  ;;  %838 = vmatmul.msk.f32.gmra.mxu2 %vm483_vm1, %v646_v11 }
  0xcc   : > { %832 = vmatmul.msk.f32.gmra.mxu3 %vm483_vm1, %v491_v12 }
 0x131   : > { %v595_v19 = vpop.f32.mrf.mxu0 }
 0x137   : > { %v528_v17 = vpop.f32.mrf.mxu3 }
 0x139   : > { %v598_v31 = vpop.f32.mrf.mxu0 }
 0x13a   : > { %v635_v22 = vpop.f32.mrf.mxu1 }
 0x13f   : > { %v531_v18 = vpop.f32.mrf.mxu3 }
 0x140   : > { %v675_v24 = vpop.f32.mrf.mxu2 }
 0x142   : > { %v638_v34 = vpop.f32.mrf.mxu1 }
 0x147   : > { %v557_v20 = vpop.f32.mrf.mxu3 }
 0x148   : > { %v558_v21 = vadd.f32 %v557_v20, %v528_v17  ;;  %v678_v36 = vpop.f32.mrf.mxu2 }
 0x14a   : > { %v601_v23 = vadd.f32 %v595_v19, %v558_v21 }
 0x14c   : > { %v641_v25 = vadd.f32 %v635_v22, %v601_v23 }
 0x14e   : > { %v681_v27 = vadd.f32 %v675_v24, %v641_v25 }
 0x14f   : > { %v560_v28 = vpop.f32.mrf.mxu3 }
 0x150   : > { %v687_v29 = vadd.f32 %v867_v26, %v681_v27  ;;  %v561_v30 = vadd.f32 %v560_v28, %v531_v18 }
 0x152   : > { %v689_v32 = vmax.f32 %v687_v29, 0.0  ;;  %v602_v33 = vadd.f32 %v598_v31, %v561_v30 }
 0x154   : > { %v642_v35 = vadd.f32 %v638_v34, %v602_v33  ;;  %839 = vmatmul.msk.f32.vlgmr.msra.gmra.mxu3 %vm483_vm1, %v689_v32 }
 0x156   : > { %v682_v37 = vadd.f32 %v678_v36, %v642_v35 }
 0x158   : > { %v688_v38 = vadd.f32 %v867_v26, %v682_v37 }
 0x15a   : > { %v690_v39 = vmax.f32 %v688_v38, 0.0 }
 0x15c   : > { %840 = vmatmul.msk.f32.gmra.mxu3 %vm483_vm1, %v690_v39 }
 0x1d7   : > { %v722_v41 = vpop.f32.mrf.mxu3 }
 0x1d8   : > { %v723_v43 = vadd.f32 %v868_v40, %v722_v41 }
 0x1da   : > { %v730_v44 = vadd.f32 %v728_v42, %v723_v43 }
 0x1dc   : > { %732 = vst.msk [vmem:[%s322_s30] sm:$0xff] %vm483_vm1, %v730_v44 }
 0x1df   : > { %v725_v45 = vpop.f32.mrf.mxu3 }
 0x1e0   : > { %v726_v47 = vadd.f32 %v868_v40, %v725_v45 }
 0x1e2   : > { %v731_v48 = vadd.f32 %v729_v46, %v726_v47 }
 0x1e4   : > { %734 = vst.msk [vmem:[%s322_s30 + $0x8] sm:$0x1] %vm733_vm3, %v731_v48 }
 0x1e5 PF: > { %s19_s27 = sadd.s32 1, %s909_s27  }
 0x1e6   : > { %p16_p7 = scmp.ge.s32.totalorder %s19_s27, 4  }
 0x1e8   :  { %18 = sbr.rel (!%p16_p7) target bundleno = 1 (0x1), region = 102 }
 0x1ed   :  { %756 = vsyncpa [#allocation4], 1 }
 0x1ee   :  { %758 = vsyncpa [#allocation4 + $0x1], 1 }

</bundles_post_ra>
